<compile_context>
chip_gen: v7x
topology: tpu7x:2x2x1
jax: 0.10.0
libtpu: 0.0.40
codegen_flags: <defaults>
</compile_context>

<pallas_src>
import functools

import jax
import jax.numpy as jnp
from jax.experimental import pallas as pl
from jax.experimental.pallas import tpu as pltpu


def _round_up(x: int, m: int) -> int:
    return ((x + m - 1) // m) * m


def _knn_kernel(zn_ref, dnt_ref, out_ref, *, k: int, kpad: int, tk: int,
                sub: int, m_total: int):
    """One (query-tile, M-chunk) grid step.

    zn_ref  : (BN, D)    pre-normalized queries
    dnt_ref : (D, TK)    pre-normalized reference chunk, transposed
    out_ref : (BN, KPAD) running k+1 LARGEST dot products (descending in lanes
                         0..k, -inf elsewhere); the block is resident across the
                         M grid axis, so it doubles as the accumulator.
    """
    m_idx = pl.program_id(1)

    @pl.when(m_idx == 0)
    def _init():
        out_ref[...] = jnp.full_like(out_ref, -jnp.inf)

    n_sub = tk // sub
    w = kpad + sub

    @pl.loop(0, n_sub)
    def _merge_sub_block(s):
        zn = zn_ref[...]                                        # (BN, D)
        col = pl.multiple_of(s * sub, sub)
        # Dot products for this 128-lane sub-block on the MXU (full f32 path).
        dot = jnp.dot(zn, dnt_ref[:, pl.ds(col, sub)],
                      preferred_element_type=jnp.float32,
                      precision=jax.lax.Precision.HIGHEST)       # (BN, sub)
        # Mask padded reference columns (global column >= m_total) to -inf.
        lane = jax.lax.broadcasted_iota(jnp.int32, (1, sub), 1)
        gcol = m_idx * tk + s * sub + lane
        dot = jnp.where(gcol < m_total, dot, -jnp.inf)

        # Merge into the running top-(k+1): old 128-wide buffer ++ new 128 dots.
        work = jnp.concatenate([out_ref[...], dot], axis=1)      # (BN, w)
        for j in range(k + 1):            # k is small -> static unroll
            v = jnp.max(work, axis=1, keepdims=True)             # (BN, 1)
            out_ref[:, j:j + 1] = v       # masked single-column store
            if j < k:
                # Remove the FIRST occurrence of the max (tie-safe); the row
                # iota is (1, w) and regenerated per round (cheap, never a
                # full-width live int32 array).
                ids = jax.lax.broadcasted_iota(jnp.int32, (1, w), 1)
                idx = jnp.min(jnp.where(work == v, ids, w),
                              axis=1, keepdims=True)             # (BN, 1)
                work = jnp.where(ids == idx, -jnp.inf, work)


def knn_forward(z, ref_batches, k: int, *, block_m: int = 1024, block_n: int = 128):
    """Pallas equivalent of KNN(k, in_dl).forward(z).

    z           : (N, D) float32 queries
    ref_batches : list of (B_i, D) float32 reference arrays (the "in_dl" data)
    returns     : (N,)  float32 -- k-th smallest pairwise distance per query
    """
    z = jnp.asarray(z, jnp.float32)
    data = jnp.concatenate([jnp.asarray(b, jnp.float32) for b in ref_batches], axis=0)
    n, d_feat = z.shape
    m = data.shape[0]

    kpad = 128   # lane-dense output slab width
    sub = 128    # merge sub-block width (one vreg lane group)
    assert k + 1 <= kpad, "k must be < 128 for this kernel"
    assert m >= k + 1, "need at least k+1 reference points"

    # ---- hoisted normalization (done once, outside the M-chunk loop) ----
    zn = z / jnp.sqrt(jnp.sum(z * z, axis=1, keepdims=True))            # (N, D)
    dn = data / jnp.sqrt(jnp.sum(data * data, axis=1, keepdims=True))   # (M, D)
    # TODO(synk): store dnt as bf16 in HBM (upcast in-kernel) on v6e/v7x when the
    # 1e-5 parity with the f32 reference is not required -- halves HBM bytes.
    dnt = dn.T                                                           # (D, M)

    # ---- pad M to a chunk multiple; padded columns are masked in-kernel ----
    tk = _round_up(min(block_m, _round_up(m, sub)), sub)
    m_pad = _round_up(m, tk)
    if m_pad != m:
        dnt = jnp.pad(dnt, ((0, 0), (0, m_pad - m)))   # zero columns

    # ---- pad N to a sublane-friendly query tile (zero rows; sliced off) ----
    bn = min(_round_up(n, 8), block_n)
    n_pad = _round_up(n, bn)
    if n_pad != n:
        zn = jnp.pad(zn, ((0, n_pad - n), (0, 0)))

    grid = (n_pad // bn, m_pad // tk)

    out = pl.pallas_call(
        functools.partial(_knn_kernel, k=k, kpad=kpad, tk=tk, sub=sub, m_total=m),
        out_shape=jax.ShapeDtypeStruct((n_pad, kpad), jnp.float32),
        grid_spec=pltpu.PrefetchScalarGridSpec(
            num_scalar_prefetch=0,
            grid=grid,
            in_specs=[
                pl.BlockSpec((bn, d_feat), lambda i, j: (i, 0)),   # queries
                pl.BlockSpec((d_feat, tk), lambda i, j: (0, j)),   # ref chunk (D, TK)
            ],
            out_specs=pl.BlockSpec((bn, kpad), lambda i, j: (i, 0)),
        ),
        compiler_params=pltpu.CompilerParams(
            dimension_semantics=("parallel", "arbitrary"),
        ),
    )(zn, dnt)

    # Column k of the descending top-(k+1) dots is the k-th largest dot, i.e.
    # the k-th smallest distance.  Distance conversion deferred to here (N sqrts).
    dot_k = out[:n, k]
    return jnp.sqrt(jnp.maximum(2.0 - 2.0 * dot_k, 0.0))


def _reference(z, ref_batches, k):
    # pure-JAX reference mirroring the PyTorch loop exactly
    zn = z / jnp.linalg.norm(z, axis=1, keepdims=True)
    dists = []
    for b in ref_batches:
        bn = b / jnp.linalg.norm(b, axis=1, keepdims=True)
        diff = bn[None, :, :] - zn[:, None, :]
        dists.append(jnp.linalg.norm(diff, axis=2))
    total = jnp.concatenate(dists, axis=1)
    return jnp.sort(total, axis=1)[:, k]


if __name__ == "__main__":
    key = jax.random.PRNGKey(0)
    k_z, k_b0, k_b1 = jax.random.split(key, 3)

    N, D = 8, 32          # queries
    B0, B1 = 16, 16       # two "dataloader" batches of reference points
    K = 3                 # k-th neighbor distance (0-indexed, as in sorted[:, k])

    z = jax.random.normal(k_z, (N, D), dtype=jnp.float32)
    ref_batches = [
        jax.random.normal(k_b0, (B0, D), dtype=jnp.float32),
        jax.random.normal(k_b1, (B1, D), dtype=jnp.float32),
    ]

    out = knn_forward(z, ref_batches, K)
    out = jax.block_until_ready(out)

    ref = _reference(z, ref_batches, K)
    assert out.shape == (N,)
    assert jnp.allclose(out, ref, atol=1e-5, rtol=1e-5), (out, ref)

    print("KERNEL_OK")
</pallas_src>

<mosaic_0001>
module attributes {stable_mosaic.version = 11 : i64} {
  func.func @_knn_kernel(%arg0: i32, %arg1: i32, %arg2: memref<8x32xf32, #tpu.memory_space<vmem>>, %arg3: memref<32x128xf32, #tpu.memory_space<vmem>>, %arg4: memref<8x128xf32, #tpu.memory_space<vmem>>) attributes {dimension_semantics = [#tpu.dimension_semantics<parallel>, #tpu.dimension_semantics<arbitrary>], iteration_bounds = array<i64: 1, 1>, scalar_prefetch = 0 : i64, scratch_operands = 0 : i64, tpu.core_type = #tpu.core_type<tc>, window_params = [{transform_indices = @transform_0, window_bounds = array<i64: 8, 32>}, {transform_indices = @transform_1, window_bounds = array<i64: 32, 128>}, {transform_indices = @transform_2, window_bounds = array<i64: 8, 128>}]} {
    %c0_i32 = arith.constant 0 : i32
    %0 = arith.cmpi eq, %arg1, %c0_i32 : i32
    %1 = arith.extui %0 : i1 to i32
    %c0_i32_0 = arith.constant 0 : i32
    %2 = arith.cmpi ne, %1, %c0_i32_0 : i32
    scf.if %2 {
      %cst_28 = arith.constant 0xFF800000 : f32
      %79 = vector.broadcast %cst_28 : f32 to vector<8x128xf32>
      %c0_29 = arith.constant 0 : index
      %c0_30 = arith.constant 0 : index
      %80 = vector.load %arg4[%c0_29, %c0_30] : memref<8x128xf32, #tpu.memory_space<vmem>>, vector<8x128xf32>
      tpu.vector_store %arg4[%c0_29, %c0_30], %79 {strides = array<i32>} : memref<8x128xf32, #tpu.memory_space<vmem>>, vector<8x128xf32>,
    } else {
    }
    %c0_i32_1 = arith.constant 0 : i32
    %c1_i32 = arith.constant 1 : i32
    %3 = arith.muli %c0_i32_1, %c1_i32 : i32
    %c0_i32_2 = arith.constant 0 : i32
    %4 = arith.addi %c0_i32_2, %3 : i32
    %c0 = arith.constant 0 : index
    %c0_3 = arith.constant 0 : index
    %5 = vector.load %arg2[%c0, %c0_3] : memref<8x32xf32, #tpu.memory_space<vmem>>, vector<8x32xf32>
    %c128_i32 = arith.constant 128 : i32
    %6 = arith.muli %4, %c128_i32 : i32
    %7 = tpu.assume_multiple %6, 128 : i32
    %c0_4 = arith.constant 0 : index
    %8 = arith.index_cast %7 : i32 to index
    %9 = vector.load %arg3[%c0_4, %8] : memref<32x128xf32, #tpu.memory_space<vmem>>, vector<32x128xf32>
    %cst = arith.constant dense<0.000000e+00> : vector<8x128xf32>
    %10 = tpu.matmul %5, %9, %cst {dimension_numbers = #tpu.dot_dimension_numbers<[1], [0], [0], [1], [0, 0, 1, 1], [], []>, precision = #tpu.contract_precision<fp32>} : vector<8x32xf32>, vector<32x128xf32>, vector<8x128xf32> -> vector<8x128xf32>
    %11 = tpu.iota {dimensions = array<i32: 1>} : vector<1x128xi32>
    %c128_i32_5 = arith.constant 128 : i32
    %12 = arith.muli %arg1, %c128_i32_5 : i32
    %c128_i32_6 = arith.constant 128 : i32
    %13 = arith.muli %4, %c128_i32_6 : i32
    %14 = arith.addi %12, %13 : i32
    %15 = vector.broadcast %14 : i32 to vector<1x128xi32>
    %16 = arith.addi %15, %11 : vector<1x128xi32>
    %c32_i32 = arith.constant 32 : i32
    %17 = vector.broadcast %c32_i32 : i32 to vector<1x128xi32>
    %18 = arith.cmpi slt, %16, %17 : vector<1x128xi32>
    %cst_7 = arith.constant 0xFF800000 : f32
    %19 = vector.shape_cast %18 : vector<1x128xi1> to vector<1x128xi1>
    %20 = vector.broadcast %19 : vector<1x128xi1> to vector<8x128xi1>
    %21 = vector.broadcast %cst_7 : f32 to vector<8x128xf32>
    %22 = arith.select %20, %10, %21 : vector<8x128xi1>, vector<8x128xf32>
    %c0_8 = arith.constant 0 : index
    %c0_9 = arith.constant 0 : index
    %23 = vector.load %arg4[%c0_8, %c0_9] : memref<8x128xf32, #tpu.memory_space<vmem>>, vector<8x128xf32>
    %24 = tpu.concatenate %23, %22 in 1 : vector<8x128xf32>, vector<8x128xf32> -> vector<8x256xf32>
    %cst_10 = arith.constant dense<0xFF800000> : vector<8xf32>
    %25 = vector.multi_reduction <maximumf>, %24, %cst_10 [1] : vector<8x256xf32> to vector<8xf32>
    %26 = vector.shape_cast %25 : vector<8xf32> to vector<8x1xf32>
    %c0_11 = arith.constant 0 : index
    %c0_12 = arith.constant 0 : index
    %27 = vector.load %arg4[%c0_11, %c0_12] : memref<8x128xf32, #tpu.memory_space<vmem>>, vector<8x1xf32>
    tpu.vector_store %arg4[%c0_11, %c0_12], %26 {strides = array<i32>} : memref<8x128xf32, #tpu.memory_space<vmem>>, vector<8x1xf32>,
    %28 = tpu.iota {dimensions = array<i32: 1>} : vector<1x256xi32>
    %29 = vector.broadcast %26 : vector<8x1xf32> to vector<8x256xf32>
    %30 = arith.cmpf oeq, %24, %29 : vector<8x256xf32>
    %c256_i32 = arith.constant 256 : i32
    %31 = vector.shape_cast %28 : vector<1x256xi32> to vector<1x256xi32>
    %32 = vector.broadcast %31 : vector<1x256xi32> to vector<8x256xi32>
    %33 = vector.broadcast %c256_i32 : i32 to vector<8x256xi32>
    %34 = arith.select %30, %32, %33 : vector<8x256xi1>, vector<8x256xi32>
    %cst_13 = arith.constant dense<2147483647> : vector<8xi32>
    %35 = vector.multi_reduction <minsi>, %34, %cst_13 [1] : vector<8x256xi32> to vector<8xi32>
    %36 = vector.shape_cast %35 : vector<8xi32> to vector<8x1xi32>
    %37 = vector.broadcast %28 : vector<1x256xi32> to vector<8x256xi32>
    %38 = vector.broadcast %36 : vector<8x1xi32> to vector<8x256xi32>
    %39 = arith.cmpi eq, %37, %38 : vector<8x256xi32>
    %cst_14 = arith.constant 0xFF800000 : f32
    %40 = vector.broadcast %cst_14 : f32 to vector<8x256xf32>
    %41 = arith.select %39, %40, %24 : vector<8x256xi1>, vector<8x256xf32>
    %cst_15 = arith.constant dense<0xFF800000> : vector<8xf32>
    %42 = vector.multi_reduction <maximumf>, %41, %cst_15 [1] : vector<8x256xf32> to vector<8xf32>
    %43 = vector.shape_cast %42 : vector<8xf32> to vector<8x1xf32>
    %c0_16 = arith.constant 0 : index
    %c1 = arith.constant 1 : index
    %44 = vector.load %arg4[%c0_16, %c1] : memref<8x128xf32, #tpu.memory_space<vmem>>, vector<8x1xf32>
    tpu.vector_store %arg4[%c0_16, %c1], %43 {strides = array<i32>} : memref<8x128xf32, #tpu.memory_space<vmem>>, vector<8x1xf32>,
    %45 = tpu.iota {dimensions = array<i32: 1>} : vector<1x256xi32>
    %46 = vector.broadcast %43 : vector<8x1xf32> to vector<8x256xf32>
    %47 = arith.cmpf oeq, %41, %46 : vector<8x256xf32>
    %c256_i32_17 = arith.constant 256 : i32
    %48 = vector.shape_cast %45 : vector<1x256xi32> to vector<1x256xi32>
    %49 = vector.broadcast %48 : vector<1x256xi32> to vector<8x256xi32>
    %50 = vector.broadcast %c256_i32_17 : i32 to vector<8x256xi32>
    %51 = arith.select %47, %49, %50 : vector<8x256xi1>, vector<8x256xi32>
    %cst_18 = arith.constant dense<2147483647> : vector<8xi32>
    %52 = vector.multi_reduction <minsi>, %51, %cst_18 [1] : vector<8x256xi32> to vector<8xi32>
    %53 = vector.shape_cast %52 : vector<8xi32> to vector<8x1xi32>
    %54 = vector.broadcast %45 : vector<1x256xi32> to vector<8x256xi32>
    %55 = vector.broadcast %53 : vector<8x1xi32> to vector<8x256xi32>
    %56 = arith.cmpi eq, %54, %55 : vector<8x256xi32>
    %cst_19 = arith.constant 0xFF800000 : f32
    %57 = vector.broadcast %cst_19 : f32 to vector<8x256xf32>
    %58 = arith.select %56, %57, %41 : vector<8x256xi1>, vector<8x256xf32>
    %cst_20 = arith.constant dense<0xFF800000> : vector<8xf32>
    %59 = vector.multi_reduction <maximumf>, %58, %cst_20 [1] : vector<8x256xf32> to vector<8xf32>
    %60 = vector.shape_cast %59 : vector<8xf32> to vector<8x1xf32>
    %c0_21 = arith.constant 0 : index
    %c2 = arith.constant 2 : index
    %61 = vector.load %arg4[%c0_21, %c2] : memref<8x128xf32, #tpu.memory_space<vmem>>, vector<8x1xf32>
    tpu.vector_store %arg4[%c0_21, %c2], %60 {strides = array<i32>} : memref<8x128xf32, #tpu.memory_space<vmem>>, vector<8x1xf32>,
    %62 = tpu.iota {dimensions = array<i32: 1>} : vector<1x256xi32>
    %63 = vector.broadcast %60 : vector<8x1xf32> to vector<8x256xf32>
    %64 = arith.cmpf oeq, %58, %63 : vector<8x256xf32>
    %c256_i32_22 = arith.constant 256 : i32
    %65 = vector.shape_cast %62 : vector<1x256xi32> to vector<1x256xi32>
    %66 = vector.broadcast %65 : vector<1x256xi32> to vector<8x256xi32>
    %67 = vector.broadcast %c256_i32_22 : i32 to vector<8x256xi32>
    %68 = arith.select %64, %66, %67 : vector<8x256xi1>, vector<8x256xi32>
    %cst_23 = arith.constant dense<2147483647> : vector<8xi32>
    %69 = vector.multi_reduction <minsi>, %68, %cst_23 [1] : vector<8x256xi32> to vector<8xi32>
    %70 = vector.shape_cast %69 : vector<8xi32> to vector<8x1xi32>
    %71 = vector.broadcast %62 : vector<1x256xi32> to vector<8x256xi32>
    %72 = vector.broadcast %70 : vector<8x1xi32> to vector<8x256xi32>
    %73 = arith.cmpi eq, %71, %72 : vector<8x256xi32>
    %cst_24 = arith.constant 0xFF800000 : f32
    %74 = vector.broadcast %cst_24 : f32 to vector<8x256xf32>
    %75 = arith.select %73, %74, %58 : vector<8x256xi1>, vector<8x256xf32>
    %cst_25 = arith.constant dense<0xFF800000> : vector<8xf32>
    %76 = vector.multi_reduction <maximumf>, %75, %cst_25 [1] : vector<8x256xf32> to vector<8xf32>
    %77 = vector.shape_cast %76 : vector<8xf32> to vector<8x1xf32>
    %c0_26 = arith.constant 0 : index
    %c3 = arith.constant 3 : index
    %78 = vector.load %arg4[%c0_26, %c3] : memref<8x128xf32, #tpu.memory_space<vmem>>, vector<8x1xf32>
    tpu.vector_store %arg4[%c0_26, %c3], %77 {strides = array<i32>} : memref<8x128xf32, #tpu.memory_space<vmem>>, vector<8x1xf32>,
    %c1_i32_27 = arith.constant 1 : i32
    return
  }
  func.func @transform_0(%arg0: i32, %arg1: i32) -> (i32, i32) {
    %c0_i32 = arith.constant 0 : i32
    %c0_i32_0 = arith.constant 0 : i32
    return %arg0, %c0_i32 : i32, i32
  }
  func.func @transform_1(%arg0: i32, %arg1: i32) -> (i32, i32) {
    %c0_i32 = arith.constant 0 : i32
    %c0_i32_0 = arith.constant 0 : i32
    return %c0_i32, %arg1 : i32, i32
  }
  func.func @transform_2(%arg0: i32, %arg1: i32) -> (i32, i32) {
    %c0_i32 = arith.constant 0 : i32
    %c0_i32_0 = arith.constant 0 : i32
    return %arg0, %c0_i32 : i32, i32
  }
}

</mosaic_0001>

<bundles_post_ra>
// kernel: tpu_custom_call.1
= control target key start
LH: loop header
LB: loop body
LE: loop exit
PB: predicated region body
PF: predicated region fallthrough
CT: control target
= control target key end

     0   :  { %7 = vsyncpa [#allocation3], 0  ;;  %s987_s0 = inlined_call_operand.hbm [shape: f32[8,32], index: 0, kind: input, shape index: {}]   ;;  %s988_s1 = inlined_call_operand.hbm [shape: f32[32,128], index: 1, kind: input, shape index: {}]   ;;  %s989_s2 = inlined_call_operand.hbm [shape: f32[8,128], index: 2, kind: output, shape index: {}]  }
   0x1   :  { %8 = vsyncpa [#allocation6], 0 }
   0x2   :  { %9 = vsyncpa [#allocation4], 0  ;;  %s881_s9 = smov [#allocation2]   ;;  %s882_s11 = smov [#allocation5]  }
   0x3   :  { %s16_s10 = sshll.u32 %s881_s9, 4  ;;  %s25_s12 = sshll.u32 %s882_s11, 4  ;;  %s17_s10 = int_to_ptr.vmem [resolvable:$true] %s16_s10  ;;  %s905_s12 = int_to_ptr.vmem [resolvable:$true] %s25_s12 }
   0x4   :  { %s809_s15 = scalar_lea.hbm %s987_s0, 128 }
   0x5   :  { %p810_p0 = scmp.ne.s32.totalorder %s987_s0, %s809_s15  ;;  %p813_p1 = scmp.lt.u32.totalorder %s809_s15, %s987_s0 }
   0x7   :  { %p815_p2 = pnand %p813_p1, %p810_p0 }
   0x9   :  { %818 = shalt.err (!%p815_p2)
}
   0xa   :  { %s819_s20 = scalar_lea.vmem %s17_s10, 128  ;;  %p824_p4 = scmp.lt.s32.totalorder %s17_s10, %s17_s10 }
   0xb   :  { %p820_p3 = scmp.ne.s32.totalorder %s17_s10, %s819_s20  ;;  %p825_p5 = scmp.lt.s32.totalorder %s819_s20, %s819_s20 }
   0xd   :  { %p826_p6 = por %p825_p5, %p824_p4 }
   0xf   :  { %p827_p7 = pnand %p826_p6, %p820_p3 }
  0x11   :  { %830 = shalt.err (!%p827_p7)
}
  0x12   :  { %19 = dma.hbm_to_vmem [thread:$0]  %s987_s0, 128, %s17_s10, [#allocation3]  }
  0x13   :  { %s831_s25 = scalar_lea.hbm %s988_s1, 512 }
  0x14   :  { %p832_p8 = scmp.ne.s32.totalorder %s988_s1, %s831_s25  ;;  %p835_p9 = scmp.lt.u32.totalorder %s831_s25, %s988_s1 }
  0x16   :  { %p837_p10 = pnand %p835_p9, %p832_p8 }
  0x18   :  { %840 = shalt.err (!%p837_p10)
}
  0x19   :  { %s841_s30 = scalar_lea.vmem %s905_s12, 512  ;;  %p846_p12 = scmp.lt.s32.totalorder %s905_s12, %s905_s12 }
  0x1a   :  { %p842_p11 = scmp.ne.s32.totalorder %s905_s12, %s841_s30  ;;  %p847_p13 = scmp.lt.s32.totalorder %s841_s30, %s841_s30 }
  0x1c   :  { %p848_p0 = por %p847_p13, %p846_p12 }
  0x1e   :  { %p849_p1 = pnand %p848_p0, %p842_p11 }
  0x20   :  { %852 = shalt.err (!%p849_p1)
}
  0x21   :  { %s883_s0 = smov 128   ;;  %s884_s3 = smov 8  }
  0x22   :  { %31 = dma.hbm_to_vmem [thread:$0]  %s988_s1, 512, %s905_s12, [#allocation6], %s883_s0, %s883_s0, %s884_s3  }
  0x23   :  { %875 = dma.done.wait [#allocation3], 128  }
  0x24   :  { %876 = vsyncadd [#allocation3], 4294967168 }
  0x25   :  { %877 = dma.done.wait [#allocation6], 512  }
  0x26   :  { %878 = vsyncadd [#allocation6], 4294966784  ;;  %v885_v0 = vmov -inf   ;;  %v886_v1 = vmov 0.0|0.0   ;;  %vm887_vm0 = vmmov 0   ;;  %v888_v2 = vmov 0.0  }
  0x27   :  { %42 = vst [vmem:[#allocation7] sm:$0xff] %v885_v0  ;;  %752 = vmatprep.subr.bf16.mxu1 %v886_v1  ;;  %770 = vmatprep.subr.bf16.mxu0 %v886_v1  ;;  %vm48_vm1 = vcmask 261120   ;;  %v44_v3 = vld [vmem:[#allocation5] sm:$0xff]  ;;  %v45_v4 = vld [vmem:[#allocation5 + $0x8] sm:$0xff]  ;;  %v46_v5 = vld [vmem:[#allocation5 + $0x10] sm:$0xff]  ;;  %v537_v42 = vlaneseq  ;;  %vm550_vm3 = vcmask 7168  }
  0x28   :  { %694 = vmatprep.mubr.msk.f32.mxu1 %vm887_vm0, %v888_v2  ;;  %727 = vmatprep.mubr.msk.f32.mxu0 %vm887_vm0, %v888_v2  ;;  %v53_v6 = vand.u32 4294901760, %v44_v3  ;;  %v56_v7 = vand.u32 4294901760, %v45_v4  ;;  %v47_v8 = vld [vmem:[#allocation5 + $0x18] sm:$0xff]  ;;  %v59_v9 = vand.u32 4294901760, %v46_v5  ;;  %vm580_vm9 = vcmask 15368   ;;  %s889_s1 = smov [#allocation7]  }
  0x29   :  { %v43_v10 = vld [vmem:[#allocation2] sm:$0xff]  ;;  %v62_v11 = vand.u32 4294901760, %v47_v8  ;;  %v960_v43 = vand.u32 127, %v537_v42  ;;  %vm609_vm15 = vcmask 23568   ;;  %s646_s6 = sshll.u32 %s889_s1, 4  ;;  %s647_s6 = int_to_ptr.vmem [resolvable:$true] %s646_s6 }
  0x2a   :  { %v50_v12 = vsel %vm48_vm1, %v43_v10, 0  ;;  %v753_v13 = vpack.c.bf16 %v56_v7, %v53_v6  ;;  %v133_v14 = vsub.f32 %v44_v3, %v53_v6  ;;  %v140_v15 = vsub.f32 %v45_v4, %v56_v7  ;;  %s853_s7 = scalar_lea.vmem %s647_s6, 128  ;;  %p858_p3 = scmp.lt.s32.totalorder %s647_s6, %s647_s6 }
  0x2b   :  { %v147_v16 = vsub.f32 %v46_v5, %v59_v9  ;;  %v154_v17 = vsub.f32 %v47_v8, %v62_v11  ;;  %v121_v18 = vand.u32 4294901760, %v50_v12  ;;  %v756_v19 = vpack.c.bf16 %v62_v11, %v59_v9  ;;  %p854_p2 = scmp.ne.s32.totalorder %s647_s6, %s853_s7  ;;  %p859_p4 = scmp.lt.s32.totalorder %s853_s7, %s853_s7 }
  0x2c   :  { %754 = vmatpush3.bf16.msra.mxu1 %v753_v13  ;;  %772 = vmatpush3.bf16.msra.mxu0 %v753_v13  ;;  %v134_v20 = vand.u32 4294901760, %v133_v14  ;;  %v141_v21 = vand.u32 4294901760, %v140_v15  ;;  %v765_v40 = vpack.c.bf16 %v140_v15, %v133_v14  ;;  %vm542_vm2 = vcmp.lt.s32.totalorder %v960_v43, 32 }
  0x2d   :  { %v148_v22 = vand.u32 4294901760, %v147_v16  ;;  %755 = vmatprep.subr.bf16.mxu1 %v886_v1  ;;  %773 = vmatprep.subr.bf16.mxu0 %v886_v1  ;;  %v122_v23 = vsub.f32 %v50_v12, %v121_v18  ;;  %v155_v24 = vand.u32 4294901760, %v154_v17  ;;  %v768_v41 = vpack.c.bf16 %v154_v17, %v147_v16  ;;  %p860_p5 = por %p859_p4, %p858_p3 }
  0x2e   :  { %v135_v25 = vsub.f32 %v133_v14, %v134_v20  ;;  %v142_v26 = vsub.f32 %v140_v15, %v141_v21  ;;  %v777_v32 = vpack.c.bf16 %v141_v21, %v134_v20  ;;  %v964_v50 = vadd.s32 128, %v960_v43 }
  0x2f   :  { %v149_v27 = vsub.f32 %v147_v16, %v148_v22  ;;  %v123_v28 = vand.u32 4294901760, %v122_v23  ;;  %v156_v29 = vsub.f32 %v154_v17, %v155_v24  ;;  %v780_v38 = vpack.c.bf16 %v155_v24, %v148_v22  ;;  %p861_p6 = pnand %p860_p5, %p854_p2 }
  0x30   :  { %757 = vmatpush3.bf16.msra.mxu1 %v756_v19  ;;  %775 = vmatpush3.bf16.msra.mxu0 %v756_v19  ;;  %v136_v30 = vand.u32 4294901760, %v135_v25  ;;  %v143_v31 = vand.u32 4294901760, %v142_v26 }
  0x31   :  { %v124_v33 = vsub.f32 %v122_v23, %v123_v28  ;;  %758 = vmatprep.subr.bf16.mxu1 %v886_v1  ;;  %776 = vmatprep.subr.bf16.mxu0 %v886_v1  ;;  %v150_v35 = vand.u32 4294901760, %v149_v27  ;;  %v157_v36 = vand.u32 4294901760, %v156_v29 }
  0x32   :  { %v759_v34 = vpack.c.bf16 %v143_v31, %v136_v30 }
  0x33   :  { %v125_v37 = vand.u32 4294901760, %v124_v33  ;;  %728 = vmatmul.mubr.f32.vlgmr.msra.gmra.mrb[0].mxu0 %v123_v28  ;;  %v762_v39 = vpack.c.bf16 %v157_v36, %v150_v35 }
  0x34   :  { %778 = vmatpush3.bf16.msra.mxu0 %v777_v32  ;;  %738 = vmatprep.mubr.msk.f32.mxu0 %vm887_vm0, %v888_v2 }
  0x35   :  { %695 = vmatmul.mubr.f32.vlgmr.msra.gmra.mrb[0].mxu1 %v125_v37  ;;  %779 = vmatprep.subr.bf16.mxu0 %v886_v1 }
  0x36   :  { %760 = vmatpush3.bf16.msra.mxu1 %v759_v34  ;;  %705 = vmatprep.mubr.msk.f32.mxu1 %vm887_vm0, %v888_v2 }
  0x37   :  { %761 = vmatprep.subr.bf16.mxu1 %v886_v1 }
  0x38   :  { %781 = vmatpush3.bf16.msra.mxu0 %v780_v38 }
  0x39   :  { %782 = vmatprep.subr.bf16.mxu0 %v886_v1 }
  0x3a   :  { %763 = vmatpush3.bf16.msra.mxu1 %v762_v39 }
  0x3b   :  { %764 = vmatprep.subr.bf16.mxu1 %v886_v1  ;;  %739 = vmatmul.mubr.f32.vlgmr.msra.gmra.mrb[0].mxu0 %v121_v18 }
  0x3c   :  { %784 = vmatpush3.bf16.msra.mxu0 %v753_v13  ;;  %749 = vmatprep.mubr.msk.f32.mxu0 %vm887_vm0, %v888_v2 }
  0x3d   :  { %706 = vmatmul.mubr.f32.vlgmr.msra.gmra.mrb[0].mxu1 %v121_v18  ;;  %785 = vmatprep.subr.bf16.mxu0 %v886_v1 }
  0x3e   :  { %766 = vmatpush3.bf16.msra.mxu1 %v765_v40  ;;  %716 = vmatprep.mubr.msk.f32.mxu1 %vm887_vm0, %v888_v2 }
  0x3f   :  { %767 = vmatprep.subr.bf16.mxu1 %v886_v1 }
  0x40   :  { %787 = vmatpush3.bf16.msra.mxu0 %v756_v19 }
  0x42   :  { %769 = vmatpush3.bf16.msra.mxu1 %v768_v41 }
  0x43   :  { %750 = vmatmul.mubr.f32.vlgmr.msra.gmra.mrb[0].mxu0 %v121_v18 }
  0x45   :  { %717 = vmatmul.mubr.f32.vlgmr.msra.gmra.mrb[0].mxu1 %v122_v23 }
 0x116   :  { %v533_v44 = vpop.f32.mrb[0].mxu0 }
 0x117   :  { %v751_v45 = vpop.f32.mrb[1].mxu0 }
 0x118   :  { %v298_v46 = vpop.f32.mrb[0].mxu1 }
 0x119   :  { %v788_v47 = vadd.f32 %v533_v44, %v298_v46  ;;  %v718_v48 = vpop.f32.mrb[1].mxu1 }
 0x11b   :  { %v545_v49 = vsel %vm542_vm2, %v788_v47, -inf }
 0x11c   :  { %548 = vmax.xlane.f32.xlu0 %v545_v49 }
 0x1a9   :  { %v549_v51 = vpop.xlane.xlu0 %548 }
 0x1aa   :  { %551 = vst.msk [vmem:[#allocation7] sm:$0xff] %vm550_vm3, %v549_v51  ;;  %vm806_vm4 = vcmp.eq.f32.partialorder %v549_v51, -inf  ;;  %vm554_vm5 = vcmp.eq.f32.partialorder %v545_v49, %v549_v51 }
 0x1ab   :  { %v555_v52 = vsel %vm806_vm4, %v960_v43, 256  ;;  %v556_v53 = vsel %vm554_vm5, %v964_v50, 256  ;;  %vm638_vm5 = vcmask 31768  }
 0x1ac   :  { %vm557_vm6 = vcmp.lt.s32.totalorder %v555_v52, %v556_v53 }
 0x1ad   :  { %v558_v54 = vsel %vm557_vm6, %v555_v52, %v556_v53 }
 0x1ae   :  { %v560_v55 = vshra.s32 %v558_v54, 16  ;;  %v559_v57 = vand.u32 65535, %v558_v54 }
 0x1b0   :  { %v562_v56 = vcvt.s32.f32 %v560_v55  ;;  %v561_v59 = vcvt.s32.f32 %v559_v57 }
 0x1b2   :  { %563 = vmin.xlane.f32.xlu0 %v562_v56 }
 0x23f   :  { %v564_v58 = vpop.xlane.xlu0 %563 }
 0x240   :  { %vm565_vm7 = vcmp.eq.f32.partialorder %v562_v56, %v564_v58  ;;  %v570_v61 = vcvt.f32.s32 %v564_v58 }
 0x241   :  { %v566_v60 = vsel %vm565_vm7, %v561_v59, inf }
 0x242   :  { %567 = vmin.xlane.f32.xlu1 %v566_v60  ;;  %v571_v63 = vshll.u32 %v570_v61, 16 }
 0x2cf   :  { %v568_v62 = vpop.xlane.xlu1 %567 }
 0x2d0   :  { %v569_v0 = vcvt.f32.s32 %v568_v62 }
 0x2d2   :  { %v572_v1 = vadd.s32 %v571_v63, %v569_v0 }
 0x2d4   :  { %vm574_vm8 = vcmp.eq.s32.totalorder %v964_v50, %v572_v1 }
 0x2d5   :  { %v576_v2 = vsel %vm574_vm8, -inf, %v545_v49 }
 0x2d6   :  { %578 = vmax.xlane.f32.xlu1 %v576_v2 }
 0x363   :  { %v579_v3 = vpop.xlane.xlu1 %578 }
 0x364   :  { %581 = vst.msk [vmem:[#allocation7] sm:$0xff] %vm580_vm9, %v579_v3  ;;  %vm807_vm10 = vcmp.eq.f32.partialorder %v579_v3, -inf  ;;  %vm583_vm11 = vcmp.eq.f32.partialorder %v576_v2, %v579_v3 }
 0x365   :  { %v584_v4 = vsel %vm807_vm10, %v960_v43, 256  ;;  %v585_v5 = vsel %vm583_vm11, %v964_v50, 256 }
 0x366   :  { %vm586_vm12 = vcmp.lt.s32.totalorder %v584_v4, %v585_v5 }
 0x367   :  { %v587_v6 = vsel %vm586_vm12, %v584_v4, %v585_v5 }
 0x368   :  { %v589_v7 = vshra.s32 %v587_v6, 16  ;;  %v588_v9 = vand.u32 65535, %v587_v6 }
 0x36a   :  { %v591_v8 = vcvt.s32.f32 %v589_v7  ;;  %v590_v11 = vcvt.s32.f32 %v588_v9 }
 0x36c   :  { %592 = vmin.xlane.f32.xlu0 %v591_v8 }
 0x3f9   :  { %v593_v10 = vpop.xlane.xlu0 %592 }
 0x3fa   :  { %vm594_vm13 = vcmp.eq.f32.partialorder %v591_v8, %v593_v10  ;;  %v599_v13 = vcvt.f32.s32 %v593_v10 }
 0x3fb   :  { %v595_v12 = vsel %vm594_vm13, %v590_v11, inf }
 0x3fc   :  { %596 = vmin.xlane.f32.xlu1 %v595_v12  ;;  %v600_v15 = vshll.u32 %v599_v13, 16 }
 0x489   :  { %v597_v14 = vpop.xlane.xlu1 %596 }
 0x48a   :  { %v598_v16 = vcvt.f32.s32 %v597_v14 }
 0x48c   :  { %v601_v17 = vadd.s32 %v600_v15, %v598_v16 }
 0x48e   :  { %vm603_vm14 = vcmp.eq.s32.totalorder %v964_v50, %v601_v17 }
 0x48f   :  { %v605_v18 = vsel %vm603_vm14, -inf, %v576_v2 }
 0x490   :  { %607 = vmax.xlane.f32.xlu0 %v605_v18 }
 0x51d   :  { %v608_v19 = vpop.xlane.xlu0 %607 }
 0x51e   :  { %610 = vst.msk [vmem:[#allocation7] sm:$0xff] %vm609_vm15, %v608_v19  ;;  %vm808_vm0 = vcmp.eq.f32.partialorder %v608_v19, -inf  ;;  %vm612_vm1 = vcmp.eq.f32.partialorder %v605_v18, %v608_v19 }
 0x51f   :  { %v613_v20 = vsel %vm808_vm0, %v960_v43, 256  ;;  %v614_v21 = vsel %vm612_vm1, %v964_v50, 256 }
 0x520   :  { %vm615_vm2 = vcmp.lt.s32.totalorder %v613_v20, %v614_v21 }
 0x521   :  { %v616_v22 = vsel %vm615_vm2, %v613_v20, %v614_v21 }
 0x522   :  { %v618_v23 = vshra.s32 %v616_v22, 16  ;;  %v617_v25 = vand.u32 65535, %v616_v22 }
 0x524   :  { %v620_v24 = vcvt.s32.f32 %v618_v23  ;;  %v619_v27 = vcvt.s32.f32 %v617_v25 }
 0x526   :  { %621 = vmin.xlane.f32.xlu1 %v620_v24 }
 0x5b3   :  { %v622_v26 = vpop.xlane.xlu1 %621 }
 0x5b4   :  { %vm623_vm3 = vcmp.eq.f32.partialorder %v620_v24, %v622_v26  ;;  %v628_v29 = vcvt.f32.s32 %v622_v26 }
 0x5b5   :  { %v624_v28 = vsel %vm623_vm3, %v619_v27, inf }
 0x5b6   :  { %625 = vmin.xlane.f32.xlu0 %v624_v28  ;;  %v629_v31 = vshll.u32 %v628_v29, 16 }
 0x643   :  { %v626_v30 = vpop.xlane.xlu0 %625 }
 0x644   :  { %v627_v32 = vcvt.f32.s32 %v626_v30 }
 0x646   :  { %v630_v33 = vadd.s32 %v629_v31, %v627_v32 }
 0x648   :  { %vm632_vm4 = vcmp.eq.s32.totalorder %v964_v50, %v630_v33 }
 0x649   :  { %v634_v34 = vsel %vm632_vm4, -inf, %v605_v18 }
 0x64a   :  { %636 = vmax.xlane.f32.xlu1 %v634_v34 }
 0x6d7   :  { %v637_v35 = vpop.xlane.xlu1 %636 }
 0x6d8   :  { %639 = vst.msk [vmem:[#allocation7] sm:$0xff] %vm638_vm5, %v637_v35 }
 0x6d9   :  { %864 = shalt.err (!%p861_p6)
}
 0x6da   :  { %s865_s10 = scalar_lea.hbm %s989_s2, 128 }
 0x6db   :  { %p866_p7 = scmp.ne.s32.totalorder %s989_s2, %s865_s10  ;;  %p869_p8 = scmp.lt.u32.totalorder %s865_s10, %s989_s2 }
 0x6dd   :  { %p871_p9 = pnand %p869_p8, %p866_p7 }
 0x6df   :  { %874 = shalt.err (!%p871_p9)
}
 0x6e0   :  { %649 = dma.vmem_to_hbm [thread:$0]  %s647_s6, 128, %s989_s2, [#allocation4]  }
 0x6e1   :  { %879 = dma.done.wait [#allocation4], 128  }
 0x6e2   :  { %880 = vsyncadd [#allocation4], 4294967168 }
 0x6e3   :  { %653 = vsyncpa [#allocation3], 1 }
 0x6e4   :  { %654 = vsyncpa [#allocation6], 1 }
 0x6e5   :  { %655 = vsyncpa [#allocation4], 1 }

</bundles_post_ra>
